<compile_context>
chip_gen: v6e
topology: v6e:2x2x1
jax: 0.10.0
libtpu: 0.0.40
codegen_flags: <defaults>
</compile_context>

<pallas_src>
import jax
import jax.numpy as jnp
import numpy as np
from jax.experimental import pallas as pl
from jax.experimental.pallas import tpu as pltpu

B = 4            # batch
CHUNK = 10       # chunk_size
NQ = 120         # number of chunks
FD = 7           # feature_dim
QS = NQ * CHUNK  # 1200
HID = 32
NCLS = 2
BN_EPS = 1e-5

# Row offsets inside the packed (280, 32) weight matrix (all multiples of 8).
_R_WIN = 0                     # rows [  0, 120) : w_in   (120, 32)
_R_RB0_W1 = NQ                 # rows [120, 152) : rb0 w1 ( 32, 32)
_R_RB0_W2 = NQ + 1 * HID       # rows [152, 184) : rb0 w2
_R_RB1_W1 = NQ + 2 * HID       # rows [184, 216) : rb1 w1
_R_RB1_W2 = NQ + 3 * HID       # rows [216, 248) : rb1 w2
_R_WOUT = NQ + 4 * HID         # rows [248, 280) : w_out  ( 32, 32) zero-padded
_WMAT_ROWS = _R_WOUT + HID     # 280


def _mlp_head_kernel(pooled_ref,   # VMEM (B, 120)  : fc_step + chunk-max output
                     wmat_ref,     # VMEM (280, 32) : packed weight matrices
                     vec_ref,      # VMEM (8, 32)   : biases + BN gamma/beta
                     out_ref):     # VMEM (B, 32)   : logits (first NCLS lanes valid)
    pooled = pooled_ref[...]                          # (B, 120)

    # --- fc_in + BatchNorm1d (training-mode batch stats, eps=1e-5) + ReLU ----
    # Weights are loaded just-in-time as static ref slices (no whole-ref load).
    h = jnp.dot(pooled, wmat_ref[_R_WIN:_R_WIN + NQ, :],
                preferred_element_type=jnp.float32) + vec_ref[0:1, :]   # (B, 32)
    mean = jnp.mean(h, axis=0, keepdims=True)
    var = jnp.mean((h - mean) ** 2, axis=0, keepdims=True)              # biased var
    h = (h - mean) * jax.lax.rsqrt(var + BN_EPS)
    h = h * vec_ref[1:2, :] + vec_ref[2:3, :]
    h = jnp.maximum(h, 0.0)

    # --- 2x ResidualBlock(32): relu(x + fc2(relu(fc1(x)))) -------------------
    def resblock(hh, w1_row, b1_row, w2_row, b2_row):
        t = jnp.dot(hh, wmat_ref[w1_row:w1_row + HID, :],
                    preferred_element_type=jnp.float32) + vec_ref[b1_row:b1_row + 1, :]
        t = jnp.maximum(t, 0.0)
        t = jnp.dot(t, wmat_ref[w2_row:w2_row + HID, :],
                    preferred_element_type=jnp.float32) + vec_ref[b2_row:b2_row + 1, :]
        return jnp.maximum(hh + t, 0.0)

    h = resblock(h, _R_RB0_W1, 3, _R_RB0_W2, 4)
    h = resblock(h, _R_RB1_W1, 5, _R_RB1_W2, 6)

    # --- fc_out (weight zero-padded to 32 cols; wrapper slices [:, :NCLS]) ---
    out_ref[...] = jnp.dot(h, wmat_ref[_R_WOUT:_R_WOUT + HID, :],
                           preferred_element_type=jnp.float32) + vec_ref[7:8, :]


def init_params(key):
    """Deterministic synthetic parameters (PyTorch Linear init, pre-transposed to (in, out))."""
    ks = jax.random.split(key, 16)

    def lin(kw, kb, fan_in, fan_out):
        bound = 1.0 / np.sqrt(fan_in)
        w = jax.random.uniform(kw, (fan_in, fan_out), jnp.float32, -bound, bound)
        b = jax.random.uniform(kb, (1, fan_out), jnp.float32, -bound, bound)
        return w, b

    p = {}
    w, b = lin(ks[0], ks[1], FD, 1)
    p["w_step"] = w.T            # (1, FD)  (PyTorch (out, in) layout)
    p["b_step"] = b              # (1, 1)
    p["w_in_t"], p["b_in"] = lin(ks[2], ks[3], NQ, HID)
    p["bn_g"] = jnp.ones((1, HID), jnp.float32)
    p["bn_b"] = jnp.zeros((1, HID), jnp.float32)
    p["rb0_w1_t"], p["rb0_b1"] = lin(ks[4], ks[5], HID, HID)
    p["rb0_w2_t"], p["rb0_b2"] = lin(ks[6], ks[7], HID, HID)
    p["rb1_w1_t"], p["rb1_b1"] = lin(ks[8], ks[9], HID, HID)
    p["rb1_w2_t"], p["rb1_b2"] = lin(ks[10], ks[11], HID, HID)
    p["w_out_t"], p["b_out"] = lin(ks[12], ks[13], HID, NCLS)
    return p


def pack_params(p):
    """Pack the parameters into two small kernel inputs (natural 32-lane width).

    # NOTE: an optional bf16 repack of the residual weights would halve the
    # remaining weight DMA (mostly relevant on v5e); kept f32 to preserve the
    # 1e-4 agreement with the f32 reference.
    """
    def pad_cols(w):
        out = jnp.zeros((w.shape[0], HID), jnp.float32)
        return out.at[:, :w.shape[1]].set(w)

    wmat = jnp.concatenate([
        p["w_in_t"],                    # rows   0:120
        p["rb0_w1_t"],                  # rows 120:152
        p["rb0_w2_t"],                  # rows 152:184
        p["rb1_w1_t"],                  # rows 184:216
        p["rb1_w2_t"],                  # rows 216:248
        pad_cols(p["w_out_t"]),         # rows 248:280
    ], axis=0)                          # (280, 32) ≈ 35 KiB

    vecs = jnp.concatenate([
        p["b_in"], p["bn_g"], p["bn_b"],
        p["rb0_b1"], p["rb0_b2"], p["rb1_b1"], p["rb1_b2"],
        pad_cols(p["b_out"]),
    ], axis=0)                          # (8, 32)

    return {"wmat": wmat, "vecs": vecs,
            "w_step": p["w_step"][0],   # (FD,)
            "b_step": p["b_step"][0, 0]}


@jax.jit
def residual_struct1_forward(x, packed):
    """x: (B, QS, FD) float32  ->  logits (B, NCLS) float32."""
    b = x.shape[0]
    # fc_step + chunk max-pool fused into the single XLA pass that reads x
    # (adding the bias before the max is exact).  The kernel then only needs
    # the tiny (B, 120) pooled tensor.
    step = jnp.einsum("bqf,f->bq", x, packed["w_step"]) + packed["b_step"]
    pooled = jnp.max(step.reshape(b, NQ, CHUNK), axis=-1)        # (B, 120)

    vmem = pl.BlockSpec(memory_space=pltpu.MemorySpace.VMEM)
    # Gridless on purpose: B is tiny and BatchNorm needs the whole batch.  For
    # large B, add a batch grid with dimension_semantics=("parallel",) and a
    # two-pass BatchNorm so both v7x TensorCores are used.  No pl.Buffered /
    # grid is added for "overlap" — with no grid all DMA is exposed anyway; a
    # cross-call weight prefetch (P10) would be the lever in a serving loop.
    out = pl.pallas_call(
        _mlp_head_kernel,
        out_shape=jax.ShapeDtypeStruct((b, HID), jnp.float32),
        in_specs=[vmem, vmem, vmem],
        out_specs=vmem,
        compiler_params=pltpu.CompilerParams(vmem_limit_bytes=4 * 1024 * 1024),
        cost_estimate=pl.CostEstimate(
            flops=2 * b * (NQ * HID + 5 * HID * HID),
            transcendentals=HID,
            bytes_accessed=(b * NQ + _WMAT_ROWS * HID + 8 * HID + b * HID) * 4,
        ),
    )(pooled, packed["wmat"], packed["vecs"])
    return out[:, :NCLS]


def ref_forward(x, p):
    """Pure-JAX reference mirroring the PyTorch forward."""
    b = x.shape[0]
    step = jnp.einsum("bqf,f->bq", x, p["w_step"][0]) + p["b_step"][0, 0]
    pooled = jnp.max(step.reshape(b, NQ, CHUNK), axis=-1)
    h = pooled @ p["w_in_t"] + p["b_in"]
    mean = jnp.mean(h, axis=0, keepdims=True)
    var = jnp.mean((h - mean) ** 2, axis=0, keepdims=True)
    h = (h - mean) / jnp.sqrt(var + BN_EPS) * p["bn_g"] + p["bn_b"]
    h = jnp.maximum(h, 0.0)
    for i in range(2):
        t = jnp.maximum(h @ p[f"rb{i}_w1_t"] + p[f"rb{i}_b1"], 0.0)
        t = t @ p[f"rb{i}_w2_t"] + p[f"rb{i}_b2"]
        h = jnp.maximum(h + t, 0.0)
    return h @ p["w_out_t"] + p["b_out"]


if __name__ == "__main__":
    key = jax.random.PRNGKey(0)
    kx, kp = jax.random.split(key)
    x = jax.random.normal(kx, (B, QS, FD), jnp.float32)
    params = init_params(kp)
    packed = pack_params(params)

    logits = residual_struct1_forward(x, packed)
    jax.block_until_ready(logits)

    expected = ref_forward(x, params)
    np.testing.assert_allclose(np.asarray(logits), np.asarray(expected),
                               rtol=1e-4, atol=1e-4)
    print("KERNEL_OK")
</pallas_src>

<mosaic_0001>
module attributes {stable_mosaic.version = 11 : i64} {
  func.func @_mlp_head_kernel(%arg0: memref<4x120xf32, #tpu.memory_space<vmem>>, %arg1: memref<280x32xf32, #tpu.memory_space<vmem>>, %arg2: memref<8x32xf32, #tpu.memory_space<vmem>>, %arg3: memref<4x32xf32, #tpu.memory_space<vmem>>) attributes {dimension_semantics = [], scalar_prefetch = 0 : i64, scratch_operands = 0 : i64, tpu.core_type = #tpu.core_type<tc>} {
    %c0 = arith.constant 0 : index
    %c0_0 = arith.constant 0 : index
    %0 = vector.load %arg0[%c0, %c0_0] : memref<4x120xf32, #tpu.memory_space<vmem>>, vector<4x120xf32>
    %c0_1 = arith.constant 0 : index
    %c0_2 = arith.constant 0 : index
    %1 = vector.load %arg1[%c0_1, %c0_2] : memref<280x32xf32, #tpu.memory_space<vmem>>, vector<120x32xf32>
    %cst = arith.constant dense<0.000000e+00> : vector<4x32xf32>
    %2 = tpu.matmul %0, %1, %cst {dimension_numbers = #tpu.dot_dimension_numbers<[1], [0], [0], [1], [0, 0, 1, 1], [], []>} : vector<4x120xf32>, vector<120x32xf32>, vector<4x32xf32> -> vector<4x32xf32>
    %c0_3 = arith.constant 0 : index
    %c0_4 = arith.constant 0 : index
    %3 = vector.load %arg2[%c0_3, %c0_4] : memref<8x32xf32, #tpu.memory_space<vmem>>, vector<1x32xf32>
    %4 = vector.broadcast %3 : vector<1x32xf32> to vector<4x32xf32>
    %5 = arith.addf %2, %4 : vector<4x32xf32>
    %cst_5 = arith.constant dense<0.000000e+00> : vector<32xf32>
    %6 = vector.multi_reduction <add>, %5, %cst_5 [0] : vector<4x32xf32> to vector<32xf32>
    %7 = vector.shape_cast %6 : vector<32xf32> to vector<1x32xf32>
    %cst_6 = arith.constant 4.000000e+00 : f32
    %8 = vector.broadcast %cst_6 : f32 to vector<1x32xf32>
    %9 = arith.divf %7, %8 : vector<1x32xf32>
    %10 = vector.broadcast %9 : vector<1x32xf32> to vector<4x32xf32>
    %11 = arith.subf %5, %10 : vector<4x32xf32>
    %12 = arith.mulf %11, %11 : vector<4x32xf32>
    %cst_7 = arith.constant dense<0.000000e+00> : vector<32xf32>
    %13 = vector.multi_reduction <add>, %12, %cst_7 [0] : vector<4x32xf32> to vector<32xf32>
    %14 = vector.shape_cast %13 : vector<32xf32> to vector<1x32xf32>
    %cst_8 = arith.constant 4.000000e+00 : f32
    %15 = vector.broadcast %cst_8 : f32 to vector<1x32xf32>
    %16 = arith.divf %14, %15 : vector<1x32xf32>
    %17 = vector.broadcast %9 : vector<1x32xf32> to vector<4x32xf32>
    %18 = arith.subf %5, %17 : vector<4x32xf32>
    %cst_9 = arith.constant 9.99999974E-6 : f32
    %19 = vector.broadcast %cst_9 : f32 to vector<1x32xf32>
    %20 = arith.addf %16, %19 : vector<1x32xf32>
    %21 = math.rsqrt %20 : vector<1x32xf32>
    %22 = vector.broadcast %21 : vector<1x32xf32> to vector<4x32xf32>
    %23 = arith.mulf %18, %22 : vector<4x32xf32>
    %c1 = arith.constant 1 : index
    %c0_10 = arith.constant 0 : index
    %24 = vector.load %arg2[%c1, %c0_10] : memref<8x32xf32, #tpu.memory_space<vmem>>, vector<1x32xf32>
    %25 = vector.broadcast %24 : vector<1x32xf32> to vector<4x32xf32>
    %26 = arith.mulf %23, %25 : vector<4x32xf32>
    %c2 = arith.constant 2 : index
    %c0_11 = arith.constant 0 : index
    %27 = vector.load %arg2[%c2, %c0_11] : memref<8x32xf32, #tpu.memory_space<vmem>>, vector<1x32xf32>
    %28 = vector.broadcast %27 : vector<1x32xf32> to vector<4x32xf32>
    %29 = arith.addf %26, %28 : vector<4x32xf32>
    %cst_12 = arith.constant 0.000000e+00 : f32
    %30 = vector.broadcast %cst_12 : f32 to vector<4x32xf32>
    %31 = arith.maximumf %29, %30 : vector<4x32xf32>
    %c120 = arith.constant 120 : index
    %c0_13 = arith.constant 0 : index
    %32 = vector.load %arg1[%c120, %c0_13] : memref<280x32xf32, #tpu.memory_space<vmem>>, vector<32x32xf32>
    %cst_14 = arith.constant dense<0.000000e+00> : vector<4x32xf32>
    %33 = tpu.matmul %31, %32, %cst_14 {dimension_numbers = #tpu.dot_dimension_numbers<[1], [0], [0], [1], [0, 0, 1, 1], [], []>} : vector<4x32xf32>, vector<32x32xf32>, vector<4x32xf32> -> vector<4x32xf32>
    %c3 = arith.constant 3 : index
    %c0_15 = arith.constant 0 : index
    %34 = vector.load %arg2[%c3, %c0_15] : memref<8x32xf32, #tpu.memory_space<vmem>>, vector<1x32xf32>
    %35 = vector.broadcast %34 : vector<1x32xf32> to vector<4x32xf32>
    %36 = arith.addf %33, %35 : vector<4x32xf32>
    %cst_16 = arith.constant 0.000000e+00 : f32
    %37 = vector.broadcast %cst_16 : f32 to vector<4x32xf32>
    %38 = arith.maximumf %36, %37 : vector<4x32xf32>
    %c152 = arith.constant 152 : index
    %c0_17 = arith.constant 0 : index
    %39 = vector.load %arg1[%c152, %c0_17] : memref<280x32xf32, #tpu.memory_space<vmem>>, vector<32x32xf32>
    %cst_18 = arith.constant dense<0.000000e+00> : vector<4x32xf32>
    %40 = tpu.matmul %38, %39, %cst_18 {dimension_numbers = #tpu.dot_dimension_numbers<[1], [0], [0], [1], [0, 0, 1, 1], [], []>} : vector<4x32xf32>, vector<32x32xf32>, vector<4x32xf32> -> vector<4x32xf32>
    %c4 = arith.constant 4 : index
    %c0_19 = arith.constant 0 : index
    %41 = vector.load %arg2[%c4, %c0_19] : memref<8x32xf32, #tpu.memory_space<vmem>>, vector<1x32xf32>
    %42 = vector.broadcast %41 : vector<1x32xf32> to vector<4x32xf32>
    %43 = arith.addf %40, %42 : vector<4x32xf32>
    %44 = arith.addf %31, %43 : vector<4x32xf32>
    %cst_20 = arith.constant 0.000000e+00 : f32
    %45 = vector.broadcast %cst_20 : f32 to vector<4x32xf32>
    %46 = arith.maximumf %44, %45 : vector<4x32xf32>
    %c184 = arith.constant 184 : index
    %c0_21 = arith.constant 0 : index
    %47 = vector.load %arg1[%c184, %c0_21] : memref<280x32xf32, #tpu.memory_space<vmem>>, vector<32x32xf32>
    %cst_22 = arith.constant dense<0.000000e+00> : vector<4x32xf32>
    %48 = tpu.matmul %46, %47, %cst_22 {dimension_numbers = #tpu.dot_dimension_numbers<[1], [0], [0], [1], [0, 0, 1, 1], [], []>} : vector<4x32xf32>, vector<32x32xf32>, vector<4x32xf32> -> vector<4x32xf32>
    %c5 = arith.constant 5 : index
    %c0_23 = arith.constant 0 : index
    %49 = vector.load %arg2[%c5, %c0_23] : memref<8x32xf32, #tpu.memory_space<vmem>>, vector<1x32xf32>
    %50 = vector.broadcast %49 : vector<1x32xf32> to vector<4x32xf32>
    %51 = arith.addf %48, %50 : vector<4x32xf32>
    %cst_24 = arith.constant 0.000000e+00 : f32
    %52 = vector.broadcast %cst_24 : f32 to vector<4x32xf32>
    %53 = arith.maximumf %51, %52 : vector<4x32xf32>
    %c216 = arith.constant 216 : index
    %c0_25 = arith.constant 0 : index
    %54 = vector.load %arg1[%c216, %c0_25] : memref<280x32xf32, #tpu.memory_space<vmem>>, vector<32x32xf32>
    %cst_26 = arith.constant dense<0.000000e+00> : vector<4x32xf32>
    %55 = tpu.matmul %53, %54, %cst_26 {dimension_numbers = #tpu.dot_dimension_numbers<[1], [0], [0], [1], [0, 0, 1, 1], [], []>} : vector<4x32xf32>, vector<32x32xf32>, vector<4x32xf32> -> vector<4x32xf32>
    %c6 = arith.constant 6 : index
    %c0_27 = arith.constant 0 : index
    %56 = vector.load %arg2[%c6, %c0_27] : memref<8x32xf32, #tpu.memory_space<vmem>>, vector<1x32xf32>
    %57 = vector.broadcast %56 : vector<1x32xf32> to vector<4x32xf32>
    %58 = arith.addf %55, %57 : vector<4x32xf32>
    %59 = arith.addf %46, %58 : vector<4x32xf32>
    %cst_28 = arith.constant 0.000000e+00 : f32
    %60 = vector.broadcast %cst_28 : f32 to vector<4x32xf32>
    %61 = arith.maximumf %59, %60 : vector<4x32xf32>
    %c248 = arith.constant 248 : index
    %c0_29 = arith.constant 0 : index
    %62 = vector.load %arg1[%c248, %c0_29] : memref<280x32xf32, #tpu.memory_space<vmem>>, vector<32x32xf32>
    %cst_30 = arith.constant dense<0.000000e+00> : vector<4x32xf32>
    %63 = tpu.matmul %61, %62, %cst_30 {dimension_numbers = #tpu.dot_dimension_numbers<[1], [0], [0], [1], [0, 0, 1, 1], [], []>} : vector<4x32xf32>, vector<32x32xf32>, vector<4x32xf32> -> vector<4x32xf32>
    %c7 = arith.constant 7 : index
    %c0_31 = arith.constant 0 : index
    %64 = vector.load %arg2[%c7, %c0_31] : memref<8x32xf32, #tpu.memory_space<vmem>>, vector<1x32xf32>
    %65 = vector.broadcast %64 : vector<1x32xf32> to vector<4x32xf32>
    %66 = arith.addf %63, %65 : vector<4x32xf32>
    %c0_32 = arith.constant 0 : index
    %c0_33 = arith.constant 0 : index
    %67 = vector.load %arg3[%c0_32, %c0_33] : memref<4x32xf32, #tpu.memory_space<vmem>>, vector<4x32xf32>
    tpu.vector_store %arg3[%c0_32, %c0_33], %66 {strides = array<i32>} : memref<4x32xf32, #tpu.memory_space<vmem>>, vector<4x32xf32>,
    return
  }
}

</mosaic_0001>

<bundles_post_ra>
// kernel: residual_struct1_forward.1
= control target key start
LH: loop header
LB: loop body
LE: loop exit
PB: predicated region body
PF: predicated region fallthrough
CT: control target
= control target key end

     0   :  { %v714_v0 = vmov 0.0   ;;  %vm715_vm0 = vmmov 0   ;;  %vm35_vm1 = vcmask 982016   ;;  %vm109_vm2 = vcmask 257024   ;;  %s926_s1 = inlined_call_operand.vmem [shape: f32[280,32], index: 1, kind: input, shape index: {}]   ;;  %s927_s0 = inlined_call_operand.vmem [shape: f32[4,120], index: 0, kind: input, shape index: {}]   ;;  %s928_s2 = inlined_call_operand.vmem [shape: f32[8,32], index: 2, kind: input, shape index: {}]   ;;  %s929_s3 = inlined_call_operand.vmem [shape: f32[4,32], index: 3, kind: output, shape index: {}]  }
   0x1   :  { %622 = vmatprep.subr.mxu0 %v714_v0  ;;  %v29_v1 = vld [vmem:[%s926_s1 + $0x70] sm:$0xff]  ;;  %v28_v2 = vld [vmem:[%s926_s1 + $0x68] sm:$0xff]  ;;  %652 = vmatprep.mubr.msk.f32.mxu0 %vm715_vm0, %v714_v0  ;;  %v27_v3 = vld [vmem:[%s926_s1 + $0x60] sm:$0xff]  ;;  %vm154_vm3 = vcmask 261120  }
   0x2   :  { %623 = vmatpush3.msra.mxu0 %v29_v1  ;;  %655 = vmatprep.subr.mxu1 %v714_v0  ;;  %v26_v4 = vld [vmem:[%s926_s1 + $0x58] sm:$0xff]  ;;  %v25_v5 = vld [vmem:[%s926_s1 + $0x50] sm:$0xff]  ;;  %v24_v6 = vld [vmem:[%s926_s1 + $0x48] sm:$0xff] }
   0x3   :  { %624 = vmatprep.subr.mxu0 %v714_v0  ;;  %663 = vmatprep.mubr.msk.f32.mxu1 %vm715_vm0, %v714_v0  ;;  %v23_v7 = vld [vmem:[%s926_s1 + $0x40] sm:$0xff]  ;;  %v22_v8 = vld [vmem:[%s926_s1 + $0x38] sm:$0xff]  ;;  %v21_v9 = vld [vmem:[%s926_s1 + $0x30] sm:$0xff] }
   0x4   :  { %625 = vmatpush3.msra.mxu0 %v28_v2  ;;  %v20_v10 = vld [vmem:[%s926_s1 + $0x28] sm:$0xff]  ;;  %v19_v11 = vld [vmem:[%s926_s1 + $0x20] sm:$0xff]  ;;  %v18_v12 = vld [vmem:[%s926_s1 + $0x18] sm:$0xff] }
   0x5   :  { %626 = vmatprep.subr.mxu0 %v714_v0  ;;  %v17_v13 = vld [vmem:[%s926_s1 + $0x10] sm:$0xff]  ;;  %v16_v14 = vld [vmem:[%s926_s1 + $0x8] sm:$0xff]  ;;  %v15_v15 = vld [vmem:[%s926_s1] sm:$0xff] }
   0x6   :  { %627 = vmatpush3.msra.mxu0 %v27_v3  ;;  %v14_v16 = vld [vmem:[%s927_s0] sm:$0xf]  ;;  %v148_v17 = vld [vmem:[%s926_s1 + $0x90] sm:$0xff]  ;;  %v147_v18 = vld [vmem:[%s926_s1 + $0x88] sm:$0xff] }
   0x7   :  { %628 = vmatprep.subr.mxu0 %v714_v0  ;;  %656 = vmatpush3.msra.mxu1 %v148_v17  ;;  %v146_v19 = vld [vmem:[%s926_s1 + $0x80] sm:$0xff]  ;;  %v145_v20 = vld [vmem:[%s926_s1 + $0x78] sm:$0xff]  ;;  %v232_v51 = vld [vmem:[%s926_s1 + $0xb0] sm:$0xff] }
   0x8   :  { %629 = vmatpush3.msra.mxu0 %v26_v4  ;;  %657 = vmatprep.subr.mxu1 %v714_v0  ;;  %v567_v21 = vld [vmem:[%s928_s2] ss:$0 sm:$0xff]  ;;  %v569_v45 = vld [vmem:[%s928_s2 + $0x1] ss:$0 sm:$0xff]  ;;  %v570_v47 = vld [vmem:[%s928_s2 + $0x2] ss:$0 sm:$0xff] }
   0x9   :  { %630 = vmatprep.subr.mxu0 %v714_v0  ;;  %658 = vmatpush3.msra.mxu1 %v147_v18  ;;  %v231_v52 = vld [vmem:[%s926_s1 + $0xa8] sm:$0xff]  ;;  %v230_v53 = vld [vmem:[%s926_s1 + $0xa0] sm:$0xff]  ;;  %v229_v54 = vld [vmem:[%s926_s1 + $0x98] sm:$0xff] }
   0xa   :  { %631 = vmatpush3.msra.mxu0 %v25_v5  ;;  %659 = vmatprep.subr.mxu1 %v714_v0  ;;  %v571_v55 = vld [vmem:[%s928_s2 + $0x3] ss:$0 sm:$0xff]  ;;  %v316_v60 = vld [vmem:[%s926_s1 + $0xd0] sm:$0xff]  ;;  %v315_v61 = vld [vmem:[%s926_s1 + $0xc8] sm:$0xff] }
   0xb   :  { %632 = vmatprep.subr.mxu0 %v714_v0  ;;  %660 = vmatpush3.msra.mxu1 %v146_v19  ;;  %v314_v62 = vld [vmem:[%s926_s1 + $0xc0] sm:$0xff]  ;;  %v313_v63 = vld [vmem:[%s926_s1 + $0xb8] sm:$0xff]  ;;  %v482_v17 = vld [vmem:[%s926_s1 + $0x108] sm:$0xff] }
   0xc   :  { %633 = vmatpush3.msra.mxu0 %v24_v6  ;;  %661 = vmatprep.subr.mxu1 %v714_v0  ;;  %v573_v1 = vld [vmem:[%s928_s2 + $0x4] ss:$0 sm:$0xff]  ;;  %v480_v19 = vld [vmem:[%s926_s1 + $0xf8] sm:$0xff] }
   0xd   :  { %634 = vmatprep.subr.mxu0 %v714_v0  ;;  %662 = vmatpush3.msra.mxu1 %v145_v20  ;;  %v481_v18 = vld [vmem:[%s926_s1 + $0x100] sm:$0xff] }
   0xe   :  { %635 = vmatpush3.msra.mxu0 %v23_v7  ;;  %666 = vmatprep.subr.mxu1 %v714_v0  ;;  %v399_v7 = vld [vmem:[%s926_s1 + $0xf0] sm:$0xff]  ;;  %v577_v20 = vld [vmem:[%s928_s2 + $0x6] ss:$0 sm:$0xff] }
   0xf   :  { %636 = vmatprep.subr.mxu0 %v714_v0 }
  0x10   :  { %637 = vmatpush3.msra.mxu0 %v22_v8  ;;  %v398_v8 = vld [vmem:[%s926_s1 + $0xe8] sm:$0xff] }
  0x11   :  { %638 = vmatprep.subr.mxu0 %v714_v0 }
  0x12   :  { %639 = vmatpush3.msra.mxu0 %v21_v9  ;;  %v397_v9 = vld [vmem:[%s926_s1 + $0xe0] sm:$0xff] }
  0x13   :  { %640 = vmatprep.subr.mxu0 %v714_v0 }
  0x14   :  { %641 = vmatpush3.msra.mxu0 %v20_v10  ;;  %v396_v10 = vld [vmem:[%s926_s1 + $0xd8] sm:$0xff] }
  0x15   :  { %642 = vmatprep.subr.mxu0 %v714_v0 }
  0x16   :  { %643 = vmatpush3.msra.mxu0 %v19_v11  ;;  %v575_v11 = vld [vmem:[%s928_s2 + $0x5] ss:$0 sm:$0xff] }
  0x17   :  { %644 = vmatprep.subr.mxu0 %v714_v0 }
  0x18   :  { %645 = vmatpush3.msra.mxu0 %v18_v12 }
  0x19   :  { %646 = vmatprep.subr.mxu0 %v714_v0 }
  0x1a   :  { %647 = vmatpush3.msra.mxu0 %v17_v13 }
  0x1b   :  { %648 = vmatprep.subr.mxu0 %v714_v0 }
  0x1c   :  { %649 = vmatpush3.msra.mxu0 %v16_v14 }
  0x1d   :  { %650 = vmatprep.subr.mxu0 %v714_v0 }
  0x1e   :  { %651 = vmatpush3.msra.mxu0 %v15_v15 }
  0x1f   :  { %653 = vmatmul.mubr.msk.f32.vlgmr.msra.gmra.mxu0 %vm35_vm1, %v14_v16  ;;  %699 = vmatprep.subr.mxu0 %v714_v0  ;;  %v483_v16 = vld [vmem:[%s926_s1 + $0x110] sm:$0xff] }
  0x20   :  { %707 = vmatprep.mubr.msk.f32.mxu0 %vm715_vm0, %v714_v0  ;;  %700 = vmatpush3.msra.mxu0 %v483_v16 }
  0x21   :  { %701 = vmatprep.subr.mxu0 %v714_v0 }
  0x22   :  { %702 = vmatpush3.msra.mxu0 %v482_v17 }
  0x23   :  { %703 = vmatprep.subr.mxu0 %v714_v0 }
  0x24   :  { %704 = vmatpush3.msra.mxu0 %v481_v18 }
  0x25   :  { %705 = vmatprep.subr.mxu0 %v714_v0 }
  0x26   :  { %706 = vmatpush3.msra.mxu0 %v480_v19 }
  0xdf   :  { %v105_v22 = vpop.f32.mrf.mxu0 }
  0xe0   :  { %v106_v23 = vadd.f32 %v567_v21, %v105_v22 }
  0xe1   :  { %v654_v24 = vpop.f32.mrf.mxu0 }
  0xe2   :  { %v110_v25 = vsel %vm109_vm2, %v106_v23, 0.0 }
  0xe3   :  { %v111_v26 = vrot.slane %v110_v25, 4 }
  0xe5   :  { %v112_v27 = vadd.f32 %v111_v26, %v110_v25 }
  0xe7   :  { %v113_v28 = vrot.slane %v112_v27, 2 }
  0xe9   :  { %v114_v29 = vadd.f32 %v113_v28, %v112_v27 }
  0xeb   :  { %v115_v30 = vrot.slane %v114_v29, 1 }
  0xed   :  { %v116_v31 = vadd.f32 %v115_v30, %v114_v29 }
  0xef   :  { %v118_v32 = vmul.f32 0.25, %v116_v31 }
  0xf1   :  { %v119_v33 = vsub.f32 %v106_v23, %v118_v32 }
  0xf3   :  { %v120_v34 = vmul.f32 %v119_v33, %v119_v33 }
  0xf5   :  { %v121_v35 = vsel %vm109_vm2, %v120_v34, 0.0 }
  0xf6   :  { %v122_v36 = vrot.slane %v121_v35, 4 }
  0xf8   :  { %v123_v37 = vadd.f32 %v122_v36, %v121_v35 }
  0xfa   :  { %v124_v38 = vrot.slane %v123_v37, 2 }
  0xfc   :  { %v125_v39 = vadd.f32 %v124_v38, %v123_v37 }
  0xfe   :  { %v126_v40 = vrot.slane %v125_v39, 1 }
 0x100   :  { %v127_v41 = vadd.f32 %v126_v40, %v125_v39 }
 0x102   :  { %v128_v42 = vmul.f32 0.25, %v127_v41 }
 0x104   :  { %v129_v43 = vadd.f32 1e-05, %v128_v42 }
 0x106   :  { %712 = vrsqrt.f32 %v129_v43 }
 0x113   :  { %v713_v44 = vpop.eup %712 }
 0x114   :  { %v131_v46 = vmul.f32 %v713_v44, %v119_v33 }
 0x116   :  { %v137_v48 = vmul.f32 %v569_v45, %v131_v46 }
 0x118   :  { %v143_v49 = vadd.f32 %v570_v47, %v137_v48 }
 0x11a   :  { %v144_v50 = vmax.f32 %v143_v49, 0.0 }
 0x11c   :  { %664 = vmatmul.mubr.msk.f32.vlgmr.msra.gmra.mxu1 %vm154_vm3, %v144_v50 }
 0x11d   :  { %667 = vmatpush3.msra.mxu1 %v232_v51  ;;  %674 = vmatprep.mubr.msk.f32.mxu1 %vm715_vm0, %v714_v0 }
 0x11e   :  { %668 = vmatprep.subr.mxu1 %v714_v0 }
 0x11f   :  { %669 = vmatpush3.msra.mxu1 %v231_v52 }
 0x120   :  { %670 = vmatprep.subr.mxu1 %v714_v0 }
 0x121   :  { %671 = vmatpush3.msra.mxu1 %v230_v53 }
 0x122   :  { %672 = vmatprep.subr.mxu1 %v714_v0 }
 0x123   :  { %673 = vmatpush3.msra.mxu1 %v229_v54 }
 0x124   :  { %677 = vmatprep.subr.mxu1 %v714_v0 }
 0x1dc   :  { %v224_v56 = vpop.f32.mrf.mxu1 }
 0x1dd   :  { %v225_v57 = vadd.f32 %v571_v55, %v224_v56 }
 0x1de   :  { %v665_v58 = vpop.f32.mrf.mxu1 }
 0x1df   :  { %v228_v59 = vmax.f32 %v225_v57, 0.0 }
 0x1e1   :  { %675 = vmatmul.mubr.msk.f32.vlgmr.msra.gmra.mxu1 %vm154_vm3, %v228_v59 }
 0x1e2   :  { %685 = vmatprep.mubr.msk.f32.mxu1 %vm715_vm0, %v714_v0  ;;  %678 = vmatpush3.msra.mxu1 %v316_v60 }
 0x1e3   :  { %679 = vmatprep.subr.mxu1 %v714_v0 }
 0x1e4   :  { %680 = vmatpush3.msra.mxu1 %v315_v61 }
 0x1e5   :  { %681 = vmatprep.subr.mxu1 %v714_v0 }
 0x1e6   :  { %682 = vmatpush3.msra.mxu1 %v314_v62 }
 0x1e7   :  { %683 = vmatprep.subr.mxu1 %v714_v0 }
 0x1e8   :  { %684 = vmatpush3.msra.mxu1 %v313_v63 }
 0x1e9   :  { %688 = vmatprep.subr.mxu1 %v714_v0 }
 0x2a1   :  { %v307_v2 = vpop.f32.mrf.mxu1 }
 0x2a2   :  { %v308_v3 = vadd.f32 %v573_v1, %v307_v2 }
 0x2a3   :  { %v676_v4 = vpop.f32.mrf.mxu1 }
 0x2a4   :  { %v311_v5 = vadd.f32 %v308_v3, %v144_v50 }
 0x2a6   :  { %v312_v6 = vmax.f32 %v311_v5, 0.0 }
 0x2a8   :  { %686 = vmatmul.mubr.msk.f32.vlgmr.msra.gmra.mxu1 %vm154_vm3, %v312_v6 }
 0x2a9   :  { %689 = vmatpush3.msra.mxu1 %v399_v7  ;;  %696 = vmatprep.mubr.msk.f32.mxu1 %vm715_vm0, %v714_v0 }
 0x2aa   :  { %690 = vmatprep.subr.mxu1 %v714_v0 }
 0x2ab   :  { %691 = vmatpush3.msra.mxu1 %v398_v8 }
 0x2ac   :  { %692 = vmatprep.subr.mxu1 %v714_v0 }
 0x2ad   :  { %693 = vmatpush3.msra.mxu1 %v397_v9 }
 0x2ae   :  { %694 = vmatprep.subr.mxu1 %v714_v0  ;;  %v579_v0 = vld [vmem:[%s928_s2 + $0x7] ss:$0 sm:$0xff] }
 0x2af   :  { %695 = vmatpush3.msra.mxu1 %v396_v10 }
 0x368   :  { %v391_v12 = vpop.f32.mrf.mxu1 }
 0x369   :  { %v392_v13 = vadd.f32 %v575_v11, %v391_v12 }
 0x36a   :  { %v687_v14 = vpop.f32.mrf.mxu1 }
 0x36b   :  { %v395_v15 = vmax.f32 %v392_v13, 0.0 }
 0x36d   :  { %697 = vmatmul.mubr.msk.f32.vlgmr.msra.gmra.mxu1 %vm154_vm3, %v395_v15 }
 0x42d   :  { %v474_v21 = vpop.f32.mrf.mxu1 }
 0x42e   :  { %v475_v22 = vadd.f32 %v577_v20, %v474_v21 }
 0x42f   :  { %v698_v23 = vpop.f32.mrf.mxu1 }
 0x430   :  { %v478_v24 = vadd.f32 %v475_v22, %v312_v6 }
 0x432   :  { %v479_v25 = vmax.f32 %v478_v24, 0.0 }
 0x434   :  { %708 = vmatmul.mubr.msk.f32.vlgmr.msra.gmra.mxu0 %vm154_vm3, %v479_v25 }
 0x4f4   :  { %v558_v26 = vpop.f32.mrf.mxu0 }
 0x4f5   :  { %v559_v27 = vadd.f32 %v579_v0, %v558_v26 }
 0x4f6   :  { %v709_v28 = vpop.f32.mrf.mxu0 }
 0x4f7   :  { %562 = vst.msk [vmem:[%s929_s3] sm:$0xf] %vm109_vm2, %v559_v27 }

</bundles_post_ra>
